<compile_context>
chip_gen: v5e
topology: v5e:2x2
jax: 0.10.0
libtpu: 0.0.40
codegen_flags: <defaults>
</compile_context>

<pallas_src>
import functools
import math

import jax
import jax.numpy as jnp
from jax.experimental import pallas as pl
from jax.experimental.pallas import tpu as pltpu


def _round_up(v, m):
    return (v + m - 1) // m * m


def _choose_tile_n(hidden_size, max_tile_n=512, min_tiles=2):
    """H-tile width: multiple of 128, <= max_tile_n.  Prefer >= min_tiles grid
    iterations (feeds both v7x TensorCores) while keeping tiles as fat as
    possible (fewer, larger, contiguous weight DMAs)."""
    h_units = _round_up(hidden_size, 128) // 128          # H in 128-lane units
    max_units = max(1, max_tile_n // 128)
    units = min(max_units, max(1, -(-h_units // min_tiles)))   # ceil div
    return units * 128


# ---------------------------------------------------------------------------
# Kernel
# ---------------------------------------------------------------------------
def _gru_kernel(x_ref, h_mxu_ref, h_res_ref,
                w_i_ref, w_h_ref, b_i_ref, b_hn_ref,
                out_ref, *, tile_n):
    """One tile_n-wide H tile of the GRU cell.

    x_ref     : [Bp, I]        bf16  (resident across the grid; MXU operand)
    h_mxu_ref : [Bp, Hp]       bf16  (resident; K operand of W_h)
    h_res_ref : [Bp, Hp]       f32   (resident; sliced in-kernel for z * h)
    w_i_ref   : [I,  3*tile_n] bf16  (contiguous tile-major fused input weights)
    w_h_ref   : [Hp, 3*tile_n] bf16  (contiguous tile-major fused hidden weights)
    b_i_ref   : [1,  3*tile_n] f32   (folded: b_ir+b_hr | b_iz+b_hz | b_in)
    b_hn_ref  : [1,  tile_n]   f32
    out_ref   : [Bp, tile_n]   f32
    """
    # Two fused matmuls (bf16 x bf16, f32 accumulation on the MXU).
    gi = jnp.dot(x_ref[...], w_i_ref[...],
                 preferred_element_type=jnp.float32) + b_i_ref[...]
    gh = jnp.dot(h_mxu_ref[...], w_h_ref[...],
                 preferred_element_type=jnp.float32)

    # Static, lane-aligned (multiple-of-128) slices of the fused gate block.
    ir, iz, inn = gi[:, :tile_n], gi[:, tile_n:2 * tile_n], gi[:, 2 * tile_n:]
    hr, hz = gh[:, :tile_n], gh[:, tile_n:2 * tile_n]
    hn = gh[:, 2 * tile_n:] + b_hn_ref[...]

    # Gating math in f32 (EUP transcendentals, VPU elementwise).
    r = jax.nn.sigmoid(ir + hr)
    z = jax.nn.sigmoid(iz + hz)
    n = jnp.tanh(inn + r * hn)

    # Previous-state tile for the blend: slice the resident f32 block.
    col0 = pl.multiple_of(pl.program_id(0) * tile_n, 128)
    h_t = h_res_ref[:, pl.ds(col0, tile_n)]
    out_ref[...] = ((1.0 - z) * n + z * h_t).astype(out_ref.dtype)


# ---------------------------------------------------------------------------
# Parameter init (mimics nn.Linear's uniform(-1/sqrt(fan_in), ...)) and
# one-time packing into the fused / padded / tile-major / bf16 layout.
# ---------------------------------------------------------------------------
def init_gru_params(key, input_size, hidden_size, dtype=jnp.float32):
    keys = jax.random.split(key, 12)

    def linear_params(kw, kb, fan_in, fan_out):
        bound = 1.0 / math.sqrt(fan_in)
        # stored pre-transposed: [fan_in, fan_out] so y = x @ W + b
        w = jax.random.uniform(kw, (fan_in, fan_out), dtype, -bound, bound)
        b = jax.random.uniform(kb, (1, fan_out), dtype, -bound, bound)
        return w, b

    w_ir, b_ir = linear_params(keys[0], keys[1], input_size, hidden_size)
    w_iz, b_iz = linear_params(keys[2], keys[3], input_size, hidden_size)
    w_in, b_in = linear_params(keys[4], keys[5], input_size, hidden_size)
    w_hr, b_hr = linear_params(keys[6], keys[7], hidden_size, hidden_size)
    w_hz, b_hz = linear_params(keys[8], keys[9], hidden_size, hidden_size)
    w_hn, b_hn = linear_params(keys[10], keys[11], hidden_size, hidden_size)
    return (w_ir, b_ir, w_iz, b_iz, w_in, b_in,
            w_hr, b_hr, w_hz, b_hz, w_hn, b_hn)


def pack_gru_params(params, hidden_size, *, tile_n=None, weight_dtype=jnp.bfloat16):
    """One-time packing: fuse gates, fold r/z biases, pad H to a multiple of
    tile_n, store TILE-MAJOR ([nt, K, 3*tile_n], each H tile contiguous in HBM
    and laid out [r | z | n]), cast weights to bf16."""
    (w_ir, b_ir, w_iz, b_iz, w_in, b_in,
     w_hr, b_hr, w_hz, b_hz, w_hn, b_hn) = params

    H = hidden_size
    if tile_n is None:
        tile_n = _choose_tile_n(H)
    assert tile_n % 128 == 0
    Hp = _round_up(H, tile_n)
    nt = Hp // tile_n

    def pad_cols(a):           # pad last (lane/H) axis -> Hp
        return jnp.pad(a, ((0, 0), (0, Hp - a.shape[1])))

    def pad_rows(a):           # pad first (K) axis -> Hp (for W_h)
        return jnp.pad(a, ((0, Hp - a.shape[0]), (0, 0)))

    def tile_major(parts):     # 3 x [K, Hp] -> [nt, K, 3*tile_n]
        K = parts[0].shape[0]
        stk = jnp.stack([p.reshape(K, nt, tile_n) for p in parts], axis=2)
        return stk.transpose(1, 0, 2, 3).reshape(nt, K, 3 * tile_n)

    w_i = tile_major([pad_cols(w_ir), pad_cols(w_iz), pad_cols(w_in)])
    w_h = tile_major([pad_rows(pad_cols(w_hr)),
                      pad_rows(pad_cols(w_hz)),
                      pad_rows(pad_cols(w_hn))])

    # Fold paired biases for r and z; b_in / b_hn must stay separate.
    b_i = tile_major([pad_cols(b_ir + b_hr),
                      pad_cols(b_iz + b_hz),
                      pad_cols(b_in)]).astype(jnp.float32)
    b_hn_p = (pad_cols(b_hn).reshape(1, nt, tile_n)
              .transpose(1, 0, 2).astype(jnp.float32))        # [nt, 1, tile_n]

    return {
        "w_i": w_i.astype(weight_dtype),      # [nt, I,  3*tile_n]
        "w_h": w_h.astype(weight_dtype),      # [nt, Hp, 3*tile_n]
        "b_i": b_i,                           # [nt, 1,  3*tile_n]
        "b_hn": b_hn_p,                       # [nt, 1,  tile_n]
        "hidden": H,
        "hidden_pad": Hp,
        "tile_n": tile_n,
    }


# ---------------------------------------------------------------------------
# Wrapper
# ---------------------------------------------------------------------------
def gru_cell_forward(x, state, packed):
    """x: [B, I] f32, state: [B, H] f32. Returns (output, new_state), [B, H]."""
    B, I = x.shape
    H = packed["hidden"]
    Hp = packed["hidden_pad"]
    tn = packed["tile_n"]
    nt = Hp // tn
    Bp = _round_up(max(B, 1), 8)              # fill sublanes for f32 gating math
    wdt = packed["w_i"].dtype

    x_p = x if Bp == B else jnp.pad(x, ((0, Bp - B), (0, 0)))
    h_p = state if (Bp == B and Hp == H) else jnp.pad(
        state, ((0, Bp - B), (0, Hp - H)))
    x_bf = x_p.astype(wdt)                    # cast once; x only feeds the MXU
    h_bf = h_p.astype(wdt)                    # cast once; K operand of W_h

    kernel = functools.partial(_gru_kernel, tile_n=tn)

    # VMEM budget: double-buffered weight/bias/output tiles + resident blocks,
    # with headroom; floor above v5e's 16 MiB scoped default, capped below
    # v7x's 64 MiB physical VMEM.
    wi_bytes = packed["w_i"].dtype.itemsize
    w_tile_bytes = (I + Hp) * 3 * tn * wi_bytes
    bias_tile_bytes = (3 * tn + tn) * 4 * 8               # sublane-padded f32
    out_tile_bytes = Bp * tn * 4
    resident_bytes = Bp * I * wi_bytes + Bp * Hp * (wi_bytes + 4)
    need = 2 * (w_tile_bytes + bias_tile_bytes + out_tile_bytes) + 2 * resident_bytes
    vmem_limit = int(min(max(2 * need, 16 << 20), 48 << 20))

    out_p = pl.pallas_call(
        kernel,
        out_shape=jax.ShapeDtypeStruct((Bp, Hp), x.dtype),
        grid=(nt,),
        in_specs=[
            pl.BlockSpec((Bp, I), lambda j: (0, 0)),           # x   (bf16, resident)
            pl.BlockSpec((Bp, Hp), lambda j: (0, 0)),          # h   (bf16, resident, K of W_h)
            pl.BlockSpec((Bp, Hp), lambda j: (0, 0)),          # h   (f32, resident, for z*h)
            pl.BlockSpec((None, I, 3 * tn), lambda j: (j, 0, 0)),   # fused W_i tile (contiguous)
            pl.BlockSpec((None, Hp, 3 * tn), lambda j: (j, 0, 0)),  # fused W_h tile (contiguous)
            pl.BlockSpec((None, 1, 3 * tn), lambda j: (j, 0, 0)),   # folded bias tile
            pl.BlockSpec((None, 1, tn), lambda j: (j, 0, 0)),       # b_hn tile
        ],
        out_specs=pl.BlockSpec((Bp, tn), lambda j: (0, j)),
        compiler_params=pltpu.CompilerParams(
            dimension_semantics=("parallel",),                 # H tiles independent
            vmem_limit_bytes=vmem_limit),
    )(x_bf, h_bf, h_p,
      packed["w_i"], packed["w_h"], packed["b_i"], packed["b_hn"])

    out = out_p[:B, :H]
    return out, out


# ---------------------------------------------------------------------------
# Pure-JAX references
# ---------------------------------------------------------------------------
def gru_cell_reference(x, state, params, weight_dtype=None):
    """weight_dtype=None -> exact f32 module semantics;
    weight_dtype=bf16 -> matched precision with the kernel's matmuls."""
    (w_ir, b_ir, w_iz, b_iz, w_in, b_in,
     w_hr, b_hr, w_hz, b_hz, w_hn, b_hn) = params

    if weight_dtype is None:
        xd, hd = x, state
        cast = lambda a: a
    else:
        cast = lambda a: a.astype(weight_dtype)
        xd, hd = cast(x), cast(state)

    def lin(a, w, b):
        return jnp.dot(a, cast(w), preferred_element_type=jnp.float32) + b

    r = jax.nn.sigmoid(lin(xd, w_ir, b_ir) + lin(hd, w_hr, b_hr))
    z = jax.nn.sigmoid(lin(xd, w_iz, b_iz) + lin(hd, w_hz, b_hz))
    n = jnp.tanh(lin(xd, w_in, b_in) + r * lin(hd, w_hn, b_hn))
    out = (1.0 - z) * n + z * state
    return out, out


# ---------------------------------------------------------------------------
# Test
# ---------------------------------------------------------------------------
if __name__ == "__main__":
    key = jax.random.PRNGKey(0)

    # (batch, input_size, hidden_size): module-like small case, a case that
    # exercises B/H padding + a 2-tile grid (tile_n=128), and a case that
    # exercises a fatter 256-wide tile with a 2-tile grid.
    configs = [(2, 16, 32), (5, 48, 200), (4, 64, 512)]

    for batch, input_size, hidden_size in configs:
        key, k_params, k_x, k_h = jax.random.split(key, 4)
        params = init_gru_params(k_params, input_size, hidden_size)
        packed = pack_gru_params(params, hidden_size)

        x = jax.random.normal(k_x, (batch, input_size), dtype=jnp.float32)
        # module's init() would give zeros; use random state to exercise math
        state = jax.random.normal(k_h, (batch, hidden_size), dtype=jnp.float32)

        out, new_state = gru_cell_forward(x, state, packed)
        out = jax.block_until_ready(out)
        assert out.shape == (batch, hidden_size)

        # Tight check vs. a matched-precision (bf16-weight/input) reference.
        ref_m, _ = gru_cell_reference(x, state, params, weight_dtype=jnp.bfloat16)
        assert jnp.allclose(out, ref_m, atol=1e-4, rtol=1e-4), \
            f"mismatch vs matched-precision reference for {(batch, input_size, hidden_size)}"

        # Semantic check vs. the original f32 module (bf16 rounding tolerance).
        ref_f32, _ = gru_cell_reference(x, state, params)
        assert jnp.allclose(out, ref_f32, atol=3e-2, rtol=3e-2), \
            f"mismatch vs f32 module reference for {(batch, input_size, hidden_size)}"

    print("KERNEL_OK")
</pallas_src>

<mosaic_0001>
module attributes {stable_mosaic.version = 11 : i64} {
  func.func @_gru_kernel(%arg0: i32, %arg1: memref<8x16xbf16, #tpu.memory_space<vmem>>, %arg2: memref<8x128xbf16, #tpu.memory_space<vmem>>, %arg3: memref<8x128xf32, #tpu.memory_space<vmem>>, %arg4: memref<1x16x384xbf16, #tpu.memory_space<vmem>>, %arg5: memref<1x128x384xbf16, #tpu.memory_space<vmem>>, %arg6: memref<1x1x384xf32, #tpu.memory_space<vmem>>, %arg7: memref<1x1x128xf32, #tpu.memory_space<vmem>>, %arg8: memref<8x128xf32, #tpu.memory_space<vmem>>) attributes {dimension_semantics = [#tpu.dimension_semantics<parallel>], iteration_bounds = array<i64: 1>, scalar_prefetch = 0 : i64, scratch_operands = 0 : i64, tpu.core_type = #tpu.core_type<tc>, window_params = [{pipeline_mode = #tpu.pipeline_mode<synchronous>, transform_indices = @transform_0, window_bounds = array<i64: 8, 16>}, {pipeline_mode = #tpu.pipeline_mode<synchronous>, transform_indices = @transform_1, window_bounds = array<i64: 8, 128>}, {pipeline_mode = #tpu.pipeline_mode<synchronous>, transform_indices = @transform_2, window_bounds = array<i64: 8, 128>}, {transform_indices = @transform_3, window_bounds = array<i64: 1, 16, 384>}, {transform_indices = @transform_4, window_bounds = array<i64: 1, 128, 384>}, {transform_indices = @transform_5, window_bounds = array<i64: 1, 1, 384>}, {transform_indices = @transform_6, window_bounds = array<i64: 1, 1, 128>}, {transform_indices = @transform_7, window_bounds = array<i64: 8, 128>}]} {
    %c0 = arith.constant 0 : index
    %c0_0 = arith.constant 0 : index
    %0 = vector.load %arg1[%c0, %c0_0] : memref<8x16xbf16, #tpu.memory_space<vmem>>, vector<8x16xbf16>
    %c0_1 = arith.constant 0 : index
    %c0_2 = arith.constant 0 : index
    %c0_3 = arith.constant 0 : index
    %1 = vector.load %arg4[%c0_1, %c0_2, %c0_3] : memref<1x16x384xbf16, #tpu.memory_space<vmem>>, vector<1x16x384xbf16>
    %2 = vector.shape_cast %1 : vector<1x16x384xbf16> to vector<16x384xbf16>
    %cst = arith.constant dense<0.000000e+00> : vector<8x384xf32>
    %3 = tpu.matmul %0, %2, %cst {dimension_numbers = #tpu.dot_dimension_numbers<[1], [0], [0], [1], [0, 0, 1, 1], [], []>} : vector<8x16xbf16>, vector<16x384xbf16>, vector<8x384xf32> -> vector<8x384xf32>
    %c0_4 = arith.constant 0 : index
    %c0_5 = arith.constant 0 : index
    %c0_6 = arith.constant 0 : index
    %4 = vector.load %arg6[%c0_4, %c0_5, %c0_6] : memref<1x1x384xf32, #tpu.memory_space<vmem>>, vector<1x1x384xf32>
    %5 = vector.shape_cast %4 : vector<1x1x384xf32> to vector<1x384xf32>
    %6 = vector.broadcast %5 : vector<1x384xf32> to vector<8x384xf32>
    %7 = arith.addf %3, %6 : vector<8x384xf32>
    %c0_7 = arith.constant 0 : index
    %c0_8 = arith.constant 0 : index
    %8 = vector.load %arg2[%c0_7, %c0_8] : memref<8x128xbf16, #tpu.memory_space<vmem>>, vector<8x128xbf16>
    %c0_9 = arith.constant 0 : index
    %c0_10 = arith.constant 0 : index
    %c0_11 = arith.constant 0 : index
    %9 = vector.load %arg5[%c0_9, %c0_10, %c0_11] : memref<1x128x384xbf16, #tpu.memory_space<vmem>>, vector<1x128x384xbf16>
    %10 = vector.shape_cast %9 : vector<1x128x384xbf16> to vector<128x384xbf16>
    %cst_12 = arith.constant dense<0.000000e+00> : vector<8x384xf32>
    %11 = tpu.matmul %8, %10, %cst_12 {dimension_numbers = #tpu.dot_dimension_numbers<[1], [0], [0], [1], [0, 0, 1, 1], [], []>} : vector<8x128xbf16>, vector<128x384xbf16>, vector<8x384xf32> -> vector<8x384xf32>
    %12 = vector.extract_strided_slice %7 {offsets = [0, 0], sizes = [8, 128], strides = [1, 1]} : vector<8x384xf32> to vector<8x128xf32>
    %13 = vector.extract_strided_slice %7 {offsets = [0, 128], sizes = [8, 128], strides = [1, 1]} : vector<8x384xf32> to vector<8x128xf32>
    %14 = vector.extract_strided_slice %7 {offsets = [0, 256], sizes = [8, 128], strides = [1, 1]} : vector<8x384xf32> to vector<8x128xf32>
    %15 = vector.extract_strided_slice %11 {offsets = [0, 0], sizes = [8, 128], strides = [1, 1]} : vector<8x384xf32> to vector<8x128xf32>
    %16 = vector.extract_strided_slice %11 {offsets = [0, 128], sizes = [8, 128], strides = [1, 1]} : vector<8x384xf32> to vector<8x128xf32>
    %17 = vector.extract_strided_slice %11 {offsets = [0, 256], sizes = [8, 128], strides = [1, 1]} : vector<8x384xf32> to vector<8x128xf32>
    %c0_13 = arith.constant 0 : index
    %c0_14 = arith.constant 0 : index
    %c0_15 = arith.constant 0 : index
    %18 = vector.load %arg7[%c0_13, %c0_14, %c0_15] : memref<1x1x128xf32, #tpu.memory_space<vmem>>, vector<1x1x128xf32>
    %19 = vector.shape_cast %18 : vector<1x1x128xf32> to vector<1x128xf32>
    %20 = vector.broadcast %19 : vector<1x128xf32> to vector<8x128xf32>
    %21 = arith.addf %17, %20 : vector<8x128xf32>
    %22 = arith.addf %12, %15 : vector<8x128xf32>
    %23 = arith.negf %22 : vector<8x128xf32>
    %24 = math.exp %23 : vector<8x128xf32>
    %cst_16 = arith.constant 1.000000e+00 : f32
    %25 = vector.broadcast %cst_16 : f32 to vector<8x128xf32>
    %26 = arith.addf %25, %24 : vector<8x128xf32>
    %27 = arith.divf %25, %26 : vector<8x128xf32>
    %28 = arith.addf %13, %16 : vector<8x128xf32>
    %29 = arith.negf %28 : vector<8x128xf32>
    %30 = math.exp %29 : vector<8x128xf32>
    %cst_17 = arith.constant 1.000000e+00 : f32
    %31 = vector.broadcast %cst_17 : f32 to vector<8x128xf32>
    %32 = arith.addf %31, %30 : vector<8x128xf32>
    %33 = arith.divf %31, %32 : vector<8x128xf32>
    %34 = arith.mulf %27, %21 : vector<8x128xf32>
    %35 = arith.addf %14, %34 : vector<8x128xf32>
    %36 = math.tanh %35 : vector<8x128xf32>
    %c128_i32 = arith.constant 128 : i32
    %37 = arith.muli %arg0, %c128_i32 : i32
    %38 = tpu.assume_multiple %37, 128 : i32
    %c0_18 = arith.constant 0 : index
    %39 = arith.index_cast %38 : i32 to index
    %40 = vector.load %arg3[%c0_18, %39] : memref<8x128xf32, #tpu.memory_space<vmem>>, vector<8x128xf32>
    %cst_19 = arith.constant 1.000000e+00 : f32
    %41 = vector.broadcast %cst_19 : f32 to vector<8x128xf32>
    %42 = arith.subf %41, %33 : vector<8x128xf32>
    %43 = arith.mulf %42, %36 : vector<8x128xf32>
    %44 = arith.mulf %33, %40 : vector<8x128xf32>
    %45 = arith.addf %43, %44 : vector<8x128xf32>
    %c0_20 = arith.constant 0 : index
    %c0_21 = arith.constant 0 : index
    %46 = vector.load %arg8[%c0_20, %c0_21] : memref<8x128xf32, #tpu.memory_space<vmem>>, vector<8x128xf32>
    tpu.vector_store %arg8[%c0_20, %c0_21], %45 {strides = array<i32>} : memref<8x128xf32, #tpu.memory_space<vmem>>, vector<8x128xf32>,
    return
  }
  func.func @transform_0(%arg0: i32) -> (i32, i32) {
    %c0_i32 = arith.constant 0 : i32
    %c0_i32_0 = arith.constant 0 : i32
    %c0_i32_1 = arith.constant 0 : i32
    return %c0_i32, %c0_i32_0 : i32, i32
  }
  func.func @transform_1(%arg0: i32) -> (i32, i32) {
    %c0_i32 = arith.constant 0 : i32
    %c0_i32_0 = arith.constant 0 : i32
    %c0_i32_1 = arith.constant 0 : i32
    return %c0_i32, %c0_i32_0 : i32, i32
  }
  func.func @transform_2(%arg0: i32) -> (i32, i32) {
    %c0_i32 = arith.constant 0 : i32
    %c0_i32_0 = arith.constant 0 : i32
    %c0_i32_1 = arith.constant 0 : i32
    return %c0_i32, %c0_i32_0 : i32, i32
  }
  func.func @transform_3(%arg0: i32) -> (i32, i32, i32) {
    %c0_i32 = arith.constant 0 : i32
    %c0_i32_0 = arith.constant 0 : i32
    %c0_i32_1 = arith.constant 0 : i32
    return %arg0, %c0_i32, %c0_i32_0 : i32, i32, i32
  }
  func.func @transform_4(%arg0: i32) -> (i32, i32, i32) {
    %c0_i32 = arith.constant 0 : i32
    %c0_i32_0 = arith.constant 0 : i32
    %c0_i32_1 = arith.constant 0 : i32
    return %arg0, %c0_i32, %c0_i32_0 : i32, i32, i32
  }
  func.func @transform_5(%arg0: i32) -> (i32, i32, i32) {
    %c0_i32 = arith.constant 0 : i32
    %c0_i32_0 = arith.constant 0 : i32
    %c0_i32_1 = arith.constant 0 : i32
    return %arg0, %c0_i32, %c0_i32_0 : i32, i32, i32
  }
  func.func @transform_6(%arg0: i32) -> (i32, i32, i32) {
    %c0_i32 = arith.constant 0 : i32
    %c0_i32_0 = arith.constant 0 : i32
    %c0_i32_1 = arith.constant 0 : i32
    return %arg0, %c0_i32, %c0_i32_0 : i32, i32, i32
  }
  func.func @transform_7(%arg0: i32) -> (i32, i32) {
    %c0_i32 = arith.constant 0 : i32
    %c0_i32_0 = arith.constant 0 : i32
    return %c0_i32, %arg0 : i32, i32
  }
}

</mosaic_0001>

<bundles_post_ra>
// kernel: tpu_custom_call.1
= control target key start
LH: loop header
LB: loop body
LE: loop exit
PB: predicated region body
PF: predicated region fallthrough
CT: control target
= control target key end

     0   :  { %12 = vsyncpa [#allocation3], 0  ;;  %s841_s0 = inlined_call_operand.hbm [shape: bf16[8,16], index: 0, kind: input, shape index: {}]   ;;  %s842_s1 = inlined_call_operand.hbm [shape: bf16[8,128], index: 1, kind: input, shape index: {}]   ;;  %s843_s2 = inlined_call_operand.hbm [shape: f32[8,128], index: 2, kind: input, shape index: {}]   ;;  %s844_s3 = inlined_call_operand.hbm [shape: bf16[1,16,384], index: 3, kind: input, shape index: {}]   ;;  %s845_s4 = inlined_call_operand.hbm [shape: bf16[1,128,384], index: 4, kind: input, shape index: {}]   ;;  %s846_s5 = inlined_call_operand.vmem [shape: f32[1,1,384], index: 5, kind: input, shape index: {}]   ;;  %s847_s6 = inlined_call_operand.vmem [shape: f32[1,1,128], index: 6, kind: input, shape index: {}]   ;;  %s848_s7 = inlined_call_operand.hbm [shape: f32[8,128], index: 7, kind: output, shape index: {}]  }
   0x1   :  { %13 = vsyncpa [#allocation6], 0 }
   0x2   :  { %14 = vsyncpa [#allocation9], 0  ;;  %s32_s26 = sshll.u32 %s842_s1, 4  ;;  %s33_s26 = int_to_ptr.hbm [resolvable:$true] %s32_s26 }
   0x3   :  { %15 = vsyncpa [#allocation4], 0  ;;  %s761_s27 = smov [#allocation5]   ;;  %s53_s8 = sshll.u32 %s844_s3, 4  ;;  %s54_s8 = int_to_ptr.hbm [resolvable:$true] %s53_s8 }
   0x4   :  { %s34_s28 = sshll.u32 %s761_s27, 4  ;;  %s762_s9 = smov [#allocation8]   ;;  %s35_s28 = int_to_ptr.vmem [resolvable:$true] %s34_s28 }
   0x5   :  { %37 = dma.hbm_to_vmem [thread:$0]  %s33_s26, 64, %s35_s28, [#allocation6]  }
   0x6   :  { %s55_s10 = sshll.u32 %s762_s9, 4  ;;  %s763_s11 = smov 192   ;;  %s56_s10 = int_to_ptr.vmem [resolvable:$true] %s55_s10 }
   0x7   :  { %s764_s12 = smov 12   ;;  %s21_s1 = sshll.u32 %s841_s0, 4  ;;  %s22_s1 = int_to_ptr.hbm [resolvable:$true] %s21_s1 }
   0x8   :  { %61 = dma.hbm_to_vmem [thread:$0]  %s54_s8, 384, %s56_s10, [#allocation9], %s763_s11, %s763_s11, %s764_s12  }
   0x9   :  { %s765_s15 = smov [#allocation2]   ;;  %s43_s3 = sshll.u32 %s843_s2, 4  ;;  %s44_s3 = int_to_ptr.hbm [resolvable:$true] %s43_s3 }
   0xa   :  { %s23_s16 = sshll.u32 %s765_s15, 4  ;;  %s766_s19 = smov [#allocation7]   ;;  %s24_s16 = int_to_ptr.vmem [resolvable:$true] %s23_s16 }
   0xb   :  { %26 = dma.hbm_to_vmem [thread:$0]  %s22_s1, 64, %s24_s16, [#allocation3]  }
   0xc   :  { %s45_s20 = sshll.u32 %s766_s19, 4  ;;  %s66_s23 = sshll.u32 %s845_s4, 4  ;;  %s46_s20 = int_to_ptr.vmem [resolvable:$true] %s45_s20  ;;  %s67_s23 = int_to_ptr.hbm [resolvable:$true] %s66_s23 }
   0xd   :  { %48 = dma.hbm_to_vmem [thread:$0]  %s44_s3, 128, %s46_s20, [#allocation6]  }
   0xe   :  { %s767_s0 = smov [#allocation10]  }
   0xf   :  { %s68_s24 = sshll.u32 %s767_s0, 4  ;;  %s69_s24 = int_to_ptr.vmem [resolvable:$true] %s68_s24 }
  0x10   :  { %74 = dma.hbm_to_vmem [thread:$0]  %s67_s23, 3072, %s69_s24, [#allocation9], %s763_s11, %s763_s11, %s764_s12  }
  0x11   :  { %753 = dma.done.wait [#allocation3], 64  }
  0x12   :  { %754 = vsyncadd [#allocation3], 4294967232 }
  0x13   :  { %755 = dma.done.wait [#allocation6], 192  }
  0x14   :  { %756 = vsyncadd [#allocation6], 4294967104 }
  0x15   :  { %757 = dma.done.wait [#allocation9], 3456  }
  0x16   :  { %758 = vsyncadd [#allocation9], 4294963840  ;;  %v551_v0 = vld [vmem:[#allocation10 + $0xa8] sm:$0xf]  ;;  %v588_v1 = vld [vmem:[#allocation10 + $0xb0] sm:$0xf0] }
  0x17   :  { %v587_v2 = vld [vmem:[#allocation10 + $0xac] sm:$0xf]  ;;  %v552_v3 = vor.u32 %v588_v1, %v551_v0  ;;  %v553_v4 = vld [vmem:[#allocation10 + $0xb4] sm:$0xf0]  ;;  %v539_v5 = vld [vmem:[#allocation10 + $0x90] sm:$0xf] }
  0x18   :  { %v585_v6 = vld [vmem:[#allocation10 + $0x98] sm:$0xf0]  ;;  %v556_v7 = vor.u32 %v587_v2, %v553_v4  ;;  %v584_v8 = vld [vmem:[#allocation10 + $0x94] sm:$0xf]  ;;  %v541_v9 = vld [vmem:[#allocation10 + $0x9c] sm:$0xf0] }
  0x19   :  { %333 = vmatpush.bf16.msra.mxu3 %v552_v3  ;;  %v540_v10 = vor.u32 %v585_v6, %v539_v5  ;;  %v544_v11 = vor.u32 %v584_v8, %v541_v9  ;;  %v527_v12 = vld [vmem:[#allocation10 + $0x78] sm:$0xf]  ;;  %v582_v13 = vld [vmem:[#allocation10 + $0x80] sm:$0xf0]  ;;  %v581_v14 = vld [vmem:[#allocation10 + $0x7c] sm:$0xf] }
  0x1a   :  { %346 = vmatpush.bf16.msra.mxu0 %v556_v7  ;;  %v529_v15 = vld [vmem:[#allocation10 + $0x84] sm:$0xf0]  ;;  %v564_v17 = vld [vmem:[#allocation8 + $0x8] sm:$0xf0]  ;;  %v528_v18 = vor.u32 %v582_v13, %v527_v12  ;;  %vm129_vm0 = vcmask 130048   ;;  %s437_s29 = sshll.u32 %s848_s7, 4  ;;  %s438_s29 = int_to_ptr.hbm [resolvable:$true] %s437_s29 }
  0x1b   :  { %v452_v16 = vld [vmem:[#allocation8] sm:$0xf]  ;;  %v532_v20 = vor.u32 %v581_v14, %v529_v15  ;;  %v515_v21 = vld [vmem:[#allocation10 + $0x60] sm:$0xf]  ;;  %v579_v22 = vld [vmem:[#allocation10 + $0x68] sm:$0xf0] }
  0x1c   :  { %v453_v19 = vor.u32 %v564_v17, %v452_v16  ;;  %v578_v23 = vld [vmem:[#allocation10 + $0x64] sm:$0xf]  ;;  %v517_v24 = vld [vmem:[#allocation10 + $0x6c] sm:$0xf0]  ;;  %v824_v25 = vld [vmem:[#allocation2] sm:$0xf]  ;;  %v516_v28 = vor.u32 %v579_v22, %v515_v21 }
  0x1d   :  { %334 = vmatpush.bf16.msra.mxu3 %v540_v10  ;;  %v563_v26 = vld [vmem:[#allocation8 + $0x4] sm:$0xf]  ;;  %v454_v27 = vld [vmem:[#allocation8 + $0xc] sm:$0xf0]  ;;  %v559_v30 = vld [vmem:[#allocation10 + $0xb0] sm:$0xf]  ;;  %v520_v32 = vor.u32 %v578_v23, %v517_v24 }
  0x1e   :  { %347 = vmatpush.bf16.msra.mxu0 %v544_v11  ;;  %140 = vmatpush.bf16.msra.mxu2 %v453_v19  ;;  %v457_v29 = vor.u32 %v563_v26, %v454_v27  ;;  %v589_v31 = vld [vmem:[#allocation10 + $0xb8] sm:$0xf0]  ;;  %v503_v33 = vld [vmem:[#allocation10 + $0x48] sm:$0xf]  ;;  %v576_v34 = vld [vmem:[#allocation10 + $0x50] sm:$0xf0] }
  0x1f   :  { %v575_v35 = vld [vmem:[#allocation10 + $0x4c] sm:$0xf]  ;;  %v560_v36 = vor.u32 %v589_v31, %v559_v30  ;;  %v505_v37 = vld [vmem:[#allocation10 + $0x54] sm:$0xf0]  ;;  %v586_v39 = vld [vmem:[#allocation10 + $0xa0] sm:$0xf0]  ;;  %v504_v41 = vor.u32 %v576_v34, %v503_v33 }
  0x20   :  { %153 = vmatpush.bf16.msra.mxu1 %v457_v29  ;;  %v547_v38 = vld [vmem:[#allocation10 + $0x98] sm:$0xf]  ;;  %v491_v42 = vld [vmem:[#allocation10 + $0x30] sm:$0xf]  ;;  %v535_v43 = vld [vmem:[#allocation10 + $0x80] sm:$0xf]  ;;  %v508_v45 = vor.u32 %v575_v35, %v505_v37 }
  0x21   :  { %335 = vmatpush.bf16.msra.mxu3 %v528_v18  ;;  %462 = vmatmul.msk.bf16.vlgmr.msra.gmra.mxu2 %vm129_vm0, %v824_v25  ;;  %v548_v40 = vor.u32 %v586_v39, %v547_v38  ;;  %v583_v44 = vld [vmem:[#allocation10 + $0x88] sm:$0xf0]  ;;  %v573_v46 = vld [vmem:[#allocation10 + $0x38] sm:$0xf0]  ;;  %v460_v47 = vld [vmem:[#allocation8 + $0x8] sm:$0xf] }
  0x22   :  { %348 = vmatpush.bf16.msra.mxu0 %v532_v20  ;;  %v565_v48 = vld [vmem:[#allocation8 + $0x10] sm:$0xf0]  ;;  %v572_v49 = vld [vmem:[#allocation10 + $0x34] sm:$0xf]  ;;  %v493_v50 = vld [vmem:[#allocation10 + $0x3c] sm:$0xf0]  ;;  %v536_v52 = vor.u32 %v583_v44, %v535_v43  ;;  %v492_v53 = vor.u32 %v573_v46, %v491_v42 }
  0x23   :  { %463 = vmatmul.msk.bf16.vlgmr.msra.gmra.mxu1 %vm129_vm0, %v824_v25  ;;  %v461_v51 = vor.u32 %v565_v48, %v460_v47  ;;  %v523_v54 = vld [vmem:[#allocation10 + $0x68] sm:$0xf]  ;;  %v580_v55 = vld [vmem:[#allocation10 + $0x70] sm:$0xf0]  ;;  %v496_v56 = vor.u32 %v572_v49, %v493_v50  ;;  %v479_v57 = vld [vmem:[#allocation10 + $0x18] sm:$0xf] }
  0x24   :  { %359 = vmatpush.bf16.msrb.mxu1 %v560_v36  ;;  %v570_v58 = vld [vmem:[#allocation10 + $0x20] sm:$0xf0]  ;;  %v569_v59 = vld [vmem:[#allocation10 + $0x1c] sm:$0xf]  ;;  %v481_v60 = vld [vmem:[#allocation10 + $0x24] sm:$0xf0]  ;;  %v524_v61 = vor.u32 %v580_v55, %v523_v54 }
  0x25   :  { %336 = vmatpush.bf16.msra.mxu3 %v516_v28  ;;  %166 = vmatpush.bf16.msrb.mxu2 %v461_v51  ;;  %v480_v62 = vor.u32 %v570_v58, %v479_v57  ;;  %v511_v63 = vld [vmem:[#allocation10 + $0x50] sm:$0xf]  ;;  %v577_v0 = vld [vmem:[#allocation10 + $0x58] sm:$0xf0]  ;;  %v484_v1 = vor.u32 %v569_v59, %v481_v60  ;;  %v467_v2 = vld [vmem:[#allocation10] sm:$0xf] }
  0x26   :  { %349 = vmatpush.bf16.msra.mxu0 %v520_v32  ;;  %v567_v3 = vld [vmem:[#allocation10 + $0x8] sm:$0xf0]  ;;  %v566_v4 = vld [vmem:[#allocation10 + $0x4] sm:$0xf]  ;;  %v469_v5 = vld [vmem:[#allocation10 + $0xc] sm:$0xf0]  ;;  %v512_v6 = vor.u32 %v577_v0, %v511_v63 }
  0x27   :  { %v468_v7 = vor.u32 %v567_v3, %v467_v2  ;;  %v499_v8 = vld [vmem:[#allocation10 + $0x38] sm:$0xf]  ;;  %v574_v9 = vld [vmem:[#allocation10 + $0x40] sm:$0xf0]  ;;  %v472_v10 = vor.u32 %v566_v4, %v469_v5  ;;  %v172_v12 = vld [vmem:[#allocation5] sm:$0xf] }
  0x28   :  { %360 = vmatpush.bf16.msrb.mxu1 %v548_v40  ;;  %v500_v11 = vor.u32 %v574_v9, %v499_v8  ;;  %v487_v13 = vld [vmem:[#allocation10 + $0x20] sm:$0xf]  ;;  %v571_v14 = vld [vmem:[#allocation10 + $0x28] sm:$0xf0]  ;;  %v475_v16 = vld [vmem:[#allocation10 + $0x8] sm:$0xf] }
  0x29   :  { %337 = vmatpush.bf16.msra.mxu3 %v504_v41  ;;  %v488_v15 = vor.u32 %v571_v14, %v487_v13  ;;  %v568_v17 = vld [vmem:[#allocation10 + $0x10] sm:$0xf0]  ;;  %v105_v22 = vld [vmem:[%s846_s5] sm:$0x7] }
  0x2a   :  { %350 = vmatpush.bf16.msra.mxu0 %v508_v45  ;;  %v476_v18 = vor.u32 %v568_v17, %v475_v16  ;;  %v108_v24 = vperm.slane %v105_v22, 1  ;;  %v107_v26 = vperm.slane %v105_v22, 0  ;;  %v598_v49 = vld [vmem:[%s847_s6] ss:$0 sm:$0xff]  ;;  %v109_v54 = vperm.slane %v105_v22, 2  ;;  %s768_s6 = smov [#allocation11]  }
  0x2b   :  { %s435_s26 = sshll.u32 %s768_s6, 4  ;;  %s436_s26 = int_to_ptr.vmem [resolvable:$true] %s435_s26 }
  0x2c   :  { %361 = vmatpush.bf16.msrb.mxu1 %v536_v52 }
  0x2d   :  { %338 = vmatpush.bf16.msra.mxu3 %v492_v53 }
  0x2e   :  { %351 = vmatpush.bf16.msra.mxu0 %v496_v56 }
  0x30   :  { %362 = vmatpush.bf16.msrb.mxu1 %v524_v61 }
  0x31   :  { %339 = vmatpush.bf16.msra.mxu3 %v480_v62  ;;  %464 = vmatmul.msk.bf16.vlgmr.msrb.gmra.mxu2 %vm129_vm0, %v824_v25 }
  0x32   :  { %352 = vmatpush.bf16.msra.mxu0 %v484_v1 }
  0x34   :  { %363 = vmatpush.bf16.msrb.mxu1 %v512_v6  ;;  %v424_v6 = vld [vmem:[#allocation7] sm:$0xff] }
  0x35   :  { %340 = vmatpush.bf16.msra.mxu3 %v468_v7 }
  0x36   :  { %353 = vmatpush.bf16.msra.mxu0 %v472_v10 }
  0x38   :  { %341 = vmatmul.bf16.vlgmr.msra.gmra.mxu3 %v172_v12  ;;  %364 = vmatpush.bf16.msrb.mxu1 %v500_v11 }
  0x39   :  { %354 = vmatmul.bf16.vlgmr.msra.gmra.mxu0 %v172_v12 }
  0x3c   :  { %365 = vmatpush.bf16.msrb.mxu1 %v488_v15 }
  0x40   :  { %366 = vmatpush.bf16.msrb.mxu1 %v476_v18 }
  0x43   :  { %367 = vmatmul.bf16.vlgmr.msrb.gmra.mxu1 %v172_v12 }
  0xa0   :  { %v155_v19 = vpop.f32.mrf.mxu1 }
  0xa1   :  { %v156_v25 = vadd.f32 %v155_v19, %v108_v24 }
  0xa4   :  { %v142_v20 = vpop.f32.mrf.mxu2 }
  0xa5   :  { %v143_v30 = vadd.f32 %v142_v20, %v107_v26 }
  0xa8   :  { %v157_v21 = vpop.f32.mrf.mxu1 }
  0xac   :  { %v144_v23 = vpop.f32.mrf.mxu2 }
  0xb4   :  { %v168_v27 = vpop.f32.mrf.mxu2 }
  0xb5   :  { %v169_v60 = vadd.f32 %v168_v27, %v109_v54 }
  0xb6   :  { %v355_v28 = vpop.f32.mrf.mxu0 }
  0xb7   :  { %v397_v29 = vadd.f32 %v355_v28, %v156_v25 }
  0xb9   :  { %v562_v31 = vmul.f32 -1.442695, %v397_v29 }
  0xbb   :  { %599 = vpow2.f32 %v562_v31  ;;  %v342_v32 = vpop.f32.mrf.mxu3 }
  0xbc   :  { %v377_v33 = vadd.f32 %v342_v32, %v143_v30  ;;  %v170_v34 = vpop.f32.mrf.mxu2 }
  0xbe   :  { %v561_v35 = vmul.f32 -1.442695, %v377_v33  ;;  %v357_v36 = vpop.f32.mrf.mxu0 }
  0xc0   :  { %601 = vpow2.f32 %v561_v35  ;;  %v368_v37 = vpop.f32.mrf.mxu1 }
  0xc1   :  { %v600_v38 = vpop.eup %599  ;;  %v376_v56 = vadd.f32 %v598_v49, %v368_v37 }
  0xc2   :  { %v401_v39 = vadd.f32 1.0, %v600_v38 }
  0xc3   :  { %v344_v40 = vpop.f32.mrf.mxu3 }
  0xc4   :  { %603 = vrcp.f32 %v401_v39  ;;  %vm407_vm4 = vweird.f32 %v401_v39  ;;  %v413_v61 = vand.u32 2147483648, %v401_v39  ;;  %v411_v0 = vand.u32 2147483647, %v401_v39 }
  0xc6   :  { %v602_v41 = vpop.eup %601  ;;  %v414_v3 = vor.u32 1.1754944e-38, %v413_v61  ;;  %vm412_vm8 = vcmp.eq.f32.partialorder %v411_v0, 8.507059e+37 }
  0xc7   :  { %v381_v42 = vadd.f32 1.0, %v602_v41 }
  0xc8   :  { %v370_v43 = vpop.f32.mrf.mxu1 }
  0xc9   :  { %605 = vrcp.f32 %v381_v42  ;;  %v393_v51 = vand.u32 2147483648, %v381_v42  ;;  %v391_v53 = vand.u32 2147483647, %v381_v42  ;;  %vm387_vm2 = vweird.f32 %v381_v42 }
  0xca   :  { %v604_v44 = vpop.eup %603 }
  0xcb   :  { %v403_v45 = vmul.f32 %v604_v44, %v401_v39  ;;  %v394_v58 = vor.u32 1.1754944e-38, %v393_v51  ;;  %vm408_vm5 = vweird.f32 %v604_v44  ;;  %vm392_vm6 = vcmp.eq.f32.partialorder %v391_v53, 8.507059e+37 }
  0xcc   :  { %vm409_vm7 = vmor %vm407_vm4, %vm408_vm5 }
  0xcd   :  { %v404_v48 = vsub.f32 1.0, %v403_v45 }
  0xcf   :  { %v606_v46 = vpop.eup %605  ;;  %v405_v55 = vmul.f32 %v604_v44, %v404_v48 }
  0xd0   :  { %v383_v47 = vmul.f32 %v606_v46, %v381_v42  ;;  %vm388_vm1 = vweird.f32 %v606_v46 }
  0xd1   :  { %vm389_vm3 = vmor %vm387_vm2, %vm388_vm1  ;;  %v406_v63 = vadd.f32 %v604_v44, %v405_v55 }
  0xd2   :  { %v384_v50 = vsub.f32 1.0, %v383_v47 }
  0xd3   :  { %v410_v4 = vsel %vm409_vm7, %v604_v44, %v406_v63 }
  0xd4   :  { %v385_v52 = vmul.f32 %v606_v46, %v384_v50  ;;  %v415_v5 = vsel %vm412_vm8, %v414_v3, %v410_v4 }
  0xd5   :  { %v425_v7 = vsub.f32 1.0, %v415_v5  ;;  %v427_v10 = vmul.f32 %v424_v6, %v415_v5 }
  0xd6   :  { %v386_v57 = vadd.f32 %v606_v46, %v385_v52 }
  0xd8   :  { %v390_v59 = vsel %vm389_vm3, %v606_v46, %v386_v57 }
  0xd9   :  { %v395_v62 = vsel %vm392_vm6, %v394_v58, %v390_v59 }
  0xda   :  { %v417_v1 = vmul.f32 %v395_v62, %v376_v56 }
  0xdc   :  { %v418_v2 = vadd.f32 %v417_v1, %v169_v60 }
  0xde   :  { %607 = vtanh.f32 %v418_v2 }
  0xe4   :  { %v608_v8 = vpop.eup %607 }
  0xe5   :  { %v426_v9 = vmul.f32 %v608_v8, %v425_v7 }
  0xe7   :  { %v428_v11 = vadd.f32 %v427_v10, %v426_v9 }
  0xe9   :  { %429 = vst [vmem:[#allocation11] sm:$0xff] %v428_v11 }
  0xea   :  { %440 = dma.vmem_to_hbm [thread:$0]  %s436_s26, 128, %s438_s29, [#allocation4]  }
  0xeb   :  { %759 = dma.done.wait [#allocation4], 128  }
  0xec   :  { %760 = vsyncadd [#allocation4], 4294967168 }
  0xed   :  { %445 = vsyncpa [#allocation3], 1 }
  0xee   :  { %446 = vsyncpa [#allocation6], 1 }
  0xef   :  { %447 = vsyncpa [#allocation9], 1 }
  0xf0   :  { %448 = vsyncpa [#allocation4], 1 }

</bundles_post_ra>
